<compile_context>
chip_gen: v5e
topology: v5e:2x2
jax: 0.10.0
libtpu: 0.0.40
codegen_flags: <defaults>
</compile_context>

<pallas_src>
import functools

import jax
import jax.numpy as jnp
from jax.experimental import pallas as pl
from jax.experimental.pallas import tpu as pltpu


def _dice_kernel(logits_ref, labels_ref, out_ref, acc_ref, *,
                 hw, tile_n, tiles_per_chunk, need_mask):
    i = pl.program_id(2)

    @pl.when(i == 0)
    def _init():
        acc_ref[...] = jnp.zeros_like(acc_ref)

    # (C, TN) logits in native dtype; single upcast for a stable softmax.
    x = logits_ref[...].astype(jnp.float32)
    m = jnp.max(x, axis=0, keepdims=True)                 # (1, TN)
    e = jnp.exp(x - m)                                    # (C, TN)  EUP
    denom = jnp.sum(e, axis=0, keepdims=True)             # (1, TN)
    r = pl.reciprocal(denom, approx=False)                # exact (keeps 1e-5 tol)

    lab = labels_ref[...].astype(jnp.int32)               # (1, TN)
    # TODO(synk): on v7x (VALU-bound regime) consider caching the class-id plane
    # in VMEM scratch and fusing the upcast to shave 1-2 VPU ops/element; this is
    # roughly neutral on HBM-bound v5e/v6e-f32, so it is left as the simple form.
    c_iota = jax.lax.broadcasted_iota(jnp.int32, x.shape, 0)
    onehot = c_iota == lab                                 # (C, TN)

    # Per-pixel selected numerator e[label] and sum e^2 (class-axis reductions only).
    e_sel = jnp.sum(jnp.where(onehot, e, 0.0), axis=0, keepdims=True)  # (1, TN)
    e_sq = jnp.sum(e * e, axis=0, keepdims=True)                       # (1, TN)

    inter_c = e_sel * r                                    # per-pixel p[label]
    psq_c = e_sq * (r * r)                                 # per-pixel sum_c p^2

    if need_mask:
        # Global pixel index of every lane in this tile; zero tail / OOB lanes.
        tile_idx = pl.program_id(1) * tiles_per_chunk + i
        px = tile_idx * tile_n + jax.lax.broadcasted_iota(jnp.int32, (1, tile_n), 1)
        valid = px < hw
        inter_c = jnp.where(valid, inter_c, 0.0)
        psq_c = jnp.where(valid, psq_c, 0.0)

    acc_ref[0:1, :] += inter_c
    acc_ref[1:2, :] += psq_c

    @pl.when(i == pl.num_programs(2) - 1)
    def _finalize():
        inter_b = jnp.sum(acc_ref[0:1, :])
        psq_b = jnp.sum(acc_ref[1:2, :])
        lane = jax.lax.broadcasted_iota(jnp.int32, out_ref.shape, 1)
        out_ref[...] = jnp.where(lane == 0, inter_b,
                                 jnp.where(lane == 1, psq_b, 0.0))


def _plan_tiles(hw, c, logit_itemsize):
    """Pick the lane tile and VMEM limit from a per-lane-column byte model that
    counts the double-buffered DMA blocks, the in-kernel (C, TN) f32
    temporaries and the accumulator, gated on the per-core VMEM capacity."""
    try:
        vmem_cap = int(pltpu.get_tpu_info().vmem_capacity_bytes)
    except Exception:  # interpret mode / older jax: assume the smallest (v7x) VMEM
        vmem_cap = 64 << 20
    budget = min(int(vmem_cap * 0.7), 48 << 20)   # ~44 MiB plan on v7x, 48 MiB on v5e/v6e

    pack = max(1, 4 // logit_itemsize)            # sub-32-bit dtypes pack along sublanes
    c_pad_in = -(-c // (8 * pack)) * (8 * pack)
    c_pad32 = -(-c // 8) * 8
    per_col = (2 * c_pad_in * logit_itemsize      # double-buffered logits DMA block
               + 2 * 32                           # double-buffered labels DMA block (padded row)
               + 4 * c_pad32 * 4                  # live (C, TN) f32 temps: x, e, e*e, onehot
               + 8 * 4)                           # (2, TN) f32 accumulator scratch

    cap = min(max(budget // per_col, 128), 16384)
    if hw <= 128:
        tile_n = hw                               # full-dim block is always legal
    elif hw <= cap:
        tile_n = hw if hw % 128 == 0 else (hw // 128) * 128
    else:
        tile_n = (cap // 128) * 128
        # Prefer a nearby exact divisor so every tile stays unmasked / lane-dense.
        t = tile_n
        while t >= max(128, tile_n // 2) and hw % t != 0:
            t -= 128
        if t >= max(128, tile_n // 2):
            tile_n = t

    vmem_limit = int(min(max(per_col * tile_n + (6 << 20), 32 << 20),
                         vmem_cap - (4 << 20)))
    return tile_n, vmem_limit


def dice_loss(outputs, labels, *, smooth=1.0):
    """outputs: (B, C, H, W) float logits; labels: (B, H, W) integer ids in [0, C)."""
    if isinstance(outputs, dict):
        outputs = outputs["segment_output"]
    if isinstance(labels, dict):
        labels = labels["label"]

    B, C, H, W = outputs.shape
    HW = H * W
    N = B * HW

    # Free, contiguous views — no HBM-materializing transpose.
    if outputs.dtype not in (jnp.float32, jnp.bfloat16, jnp.float16):
        outputs = outputs.astype(jnp.float32)
    logits3d = outputs.reshape(B, C, HW)
    # Keep labels in a narrow native integer dtype (cuts label HBM reads); cast in-kernel.
    if labels.dtype not in (jnp.int32, jnp.int8, jnp.uint8):
        labels = labels.astype(jnp.int32)
    labels3d = labels.reshape(B, 1, HW)

    tile_n, vmem_limit = _plan_tiles(HW, C, jnp.dtype(logits3d.dtype).itemsize)
    total_tiles = -(-HW // tile_n)

    # Split the pixel axis into parallel chunks when the batch alone cannot feed
    # both v7x TensorCores; costs only an extra finalize on 1-TC v5e/v6e.
    n_chunks = 2 if (B < 2 and total_tiles > 1) else 1
    tiles_per_chunk = -(-total_tiles // n_chunks)
    need_mask = (n_chunks * tiles_per_chunk * tile_n) != HW
    last_tile = total_tiles - 1

    def px_block(b, c, i):
        t = c * tiles_per_chunk + i
        return (b, 0, jnp.minimum(t, last_tile))   # clamp fully-OOB tiles (masked in-kernel)

    kernel = functools.partial(_dice_kernel, hw=HW, tile_n=tile_n,
                               tiles_per_chunk=tiles_per_chunk, need_mask=need_mask)

    # TODO(synk): assumes labels lie in [0, C) (the only case where the PyTorch
    # F.one_hot path is well-defined); an ignore_index-style label would need
    # in-kernel masking, and the constant-N union term below would no longer hold.
    # TODO(synk): if profiling shows DMA bubbles at small C on v5e, add
    # pipeline_mode=pl.Buffered(3) on the logits BlockSpec.
    partials = pl.pallas_call(
        kernel,
        out_shape=jax.ShapeDtypeStruct((B, n_chunks, 1, 128), jnp.float32),
        grid_spec=pltpu.PrefetchScalarGridSpec(
            num_scalar_prefetch=0,
            grid=(B, n_chunks, tiles_per_chunk),
            in_specs=[
                pl.BlockSpec((None, C, tile_n), px_block),
                pl.BlockSpec((None, 1, tile_n), px_block),
            ],
            out_specs=pl.BlockSpec((None, None, 1, 128), lambda b, c, i: (b, c, 0, 0)),
            scratch_shapes=[pltpu.VMEM((2, tile_n), jnp.float32)],
        ),
        compiler_params=pltpu.CompilerParams(
            dimension_semantics=("parallel", "parallel", "arbitrary"),
            vmem_limit_bytes=vmem_limit,
        ),
    )(logits3d, labels3d)

    inter = jnp.sum(partials[:, :, 0, 0])
    p_sq = jnp.sum(partials[:, :, 0, 1])
    union = p_sq + jnp.float32(N)            # + sum(onehot**2) == number of pixels
    loss = 1.0 - (smooth + 2.0 * inter) / (smooth + union)
    return {"total_loss": loss}


def _reference_dice_loss(outputs, labels, smooth=1.0):
    p = jax.nn.softmax(outputs.astype(jnp.float32), axis=1)
    C = outputs.shape[1]
    onehot = jax.nn.one_hot(labels, C, dtype=jnp.float32)          # (B,H,W,C)
    onehot = jnp.transpose(onehot, (0, 3, 1, 2))                   # (B,C,H,W)
    inter = jnp.sum(p * onehot)
    union = jnp.sum(p * p) + jnp.sum(onehot * onehot)
    return 1.0 - (smooth + 2.0 * inter) / (smooth + union)


if __name__ == "__main__":
    key = jax.random.PRNGKey(0)
    k1, k2, k3, k4 = jax.random.split(key, 4)

    # Test 1: 128-aligned spatial size, B >= 2 (batch-parallel path, no tail mask).
    B, C, H, W = 2, 4, 16, 16
    x = jax.random.normal(k1, (B, C, H, W), dtype=jnp.float32)
    labels = jax.random.randint(k2, (B, H, W), 0, C, dtype=jnp.int32)
    out = dice_loss(x, labels)
    loss = jax.block_until_ready(out["total_loss"])
    ref = _reference_dice_loss(x, labels)
    assert jnp.allclose(loss, ref, atol=1e-5, rtol=1e-5), (loss, ref)

    # Test 2: non-128-divisible image, B == 1 (pixel-chunked + masked-tail path).
    B2, C2, H2, W2 = 1, 5, 20, 25
    x2 = jax.random.normal(k3, (B2, C2, H2, W2), dtype=jnp.float32)
    labels2 = jax.random.randint(k4, (B2, H2, W2), 0, C2, dtype=jnp.int32)
    out2 = dice_loss(x2, labels2)
    loss2 = jax.block_until_ready(out2["total_loss"])
    ref2 = _reference_dice_loss(x2, labels2)
    assert jnp.allclose(loss2, ref2, atol=1e-5, rtol=1e-5), (loss2, ref2)

    print("KERNEL_OK")
</pallas_src>

<mosaic_0001>
module attributes {stable_mosaic.version = 11 : i64} {
  func.func @_dice_kernel(%arg0: i32, %arg1: i32, %arg2: i32, %arg3: memref<1x4x256xf32, #tpu.memory_space<vmem>>, %arg4: memref<1x1x256xi32, #tpu.memory_space<vmem>>, %arg5: memref<1x1x1x128xf32, #tpu.memory_space<vmem>>, %arg6: memref<2x256xf32, #tpu.memory_space<vmem>>) attributes {dimension_semantics = [#tpu.dimension_semantics<parallel>, #tpu.dimension_semantics<parallel>, #tpu.dimension_semantics<arbitrary>], iteration_bounds = array<i64: 2, 1, 1>, scalar_prefetch = 0 : i64, scratch_operands = 1 : i64, tpu.core_type = #tpu.core_type<tc>, window_params = [{transform_indices = @transform_0, window_bounds = array<i64: 1, 4, 256>}, {transform_indices = @transform_1, window_bounds = array<i64: 1, 1, 256>}, {transform_indices = @transform_2, window_bounds = array<i64: 1, 1, 1, 128>}]} {
    %c0_i32 = arith.constant 0 : i32
    %0 = arith.cmpi eq, %arg2, %c0_i32 : i32
    %1 = arith.extui %0 : i1 to i32
    %c0_i32_0 = arith.constant 0 : i32
    %2 = arith.cmpi ne, %1, %c0_i32_0 : i32
    scf.if %2 {
      %cst_19 = arith.constant 0.000000e+00 : f32
      %37 = vector.broadcast %cst_19 : f32 to vector<2x256xf32>
      %c0_20 = arith.constant 0 : index
      %c0_21 = arith.constant 0 : index
      %38 = vector.load %arg6[%c0_20, %c0_21] : memref<2x256xf32, #tpu.memory_space<vmem>>, vector<2x256xf32>
      tpu.vector_store %arg6[%c0_20, %c0_21], %37 {strides = array<i32>} : memref<2x256xf32, #tpu.memory_space<vmem>>, vector<2x256xf32>,
    } else {
    }
    %c0 = arith.constant 0 : index
    %c0_1 = arith.constant 0 : index
    %c0_2 = arith.constant 0 : index
    %3 = vector.load %arg3[%c0, %c0_1, %c0_2] : memref<1x4x256xf32, #tpu.memory_space<vmem>>, vector<1x4x256xf32>
    %4 = vector.shape_cast %3 : vector<1x4x256xf32> to vector<4x256xf32>
    %cst = arith.constant dense<0xFF800000> : vector<256xf32>
    %5 = vector.multi_reduction <maximumf>, %4, %cst [0] : vector<4x256xf32> to vector<256xf32>
    %6 = vector.shape_cast %5 : vector<256xf32> to vector<1x256xf32>
    %7 = vector.broadcast %6 : vector<1x256xf32> to vector<4x256xf32>
    %8 = arith.subf %4, %7 : vector<4x256xf32>
    %9 = math.exp %8 : vector<4x256xf32>
    %cst_3 = arith.constant dense<0.000000e+00> : vector<256xf32>
    %10 = vector.multi_reduction <add>, %9, %cst_3 [0] : vector<4x256xf32> to vector<256xf32>
    %11 = vector.shape_cast %10 : vector<256xf32> to vector<1x256xf32>
    %12 = tpu.reciprocal %11 : vector<1x256xf32> -> vector<1x256xf32>
    %c0_4 = arith.constant 0 : index
    %c0_5 = arith.constant 0 : index
    %c0_6 = arith.constant 0 : index
    %13 = vector.load %arg4[%c0_4, %c0_5, %c0_6] : memref<1x1x256xi32, #tpu.memory_space<vmem>>, vector<1x1x256xi32>
    %14 = vector.shape_cast %13 : vector<1x1x256xi32> to vector<1x256xi32>
    %15 = tpu.iota {dimensions = array<i32: 0>} : vector<4x256xi32>
    %16 = vector.broadcast %14 : vector<1x256xi32> to vector<4x256xi32>
    %17 = arith.cmpi eq, %15, %16 : vector<4x256xi32>
    %cst_7 = arith.constant 0.000000e+00 : f32
    %18 = vector.broadcast %cst_7 : f32 to vector<4x256xf32>
    %19 = arith.select %17, %9, %18 : vector<4x256xi1>, vector<4x256xf32>
    %cst_8 = arith.constant dense<0.000000e+00> : vector<256xf32>
    %20 = vector.multi_reduction <add>, %19, %cst_8 [0] : vector<4x256xf32> to vector<256xf32>
    %21 = vector.shape_cast %20 : vector<256xf32> to vector<1x256xf32>
    %22 = arith.mulf %9, %9 : vector<4x256xf32>
    %cst_9 = arith.constant dense<0.000000e+00> : vector<256xf32>
    %23 = vector.multi_reduction <add>, %22, %cst_9 [0] : vector<4x256xf32> to vector<256xf32>
    %24 = vector.shape_cast %23 : vector<256xf32> to vector<1x256xf32>
    %25 = arith.mulf %21, %12 : vector<1x256xf32>
    %26 = arith.mulf %12, %12 : vector<1x256xf32>
    %27 = arith.mulf %24, %26 : vector<1x256xf32>
    %c0_10 = arith.constant 0 : index
    %c0_11 = arith.constant 0 : index
    %28 = vector.load %arg6[%c0_10, %c0_11] : memref<2x256xf32, #tpu.memory_space<vmem>>, vector<1x256xf32>
    %29 = arith.addf %28, %25 : vector<1x256xf32>
    %c0_12 = arith.constant 0 : index
    %c0_13 = arith.constant 0 : index
    %30 = vector.load %arg6[%c0_12, %c0_13] : memref<2x256xf32, #tpu.memory_space<vmem>>, vector<1x256xf32>
    tpu.vector_store %arg6[%c0_12, %c0_13], %29 {strides = array<i32>} : memref<2x256xf32, #tpu.memory_space<vmem>>, vector<1x256xf32>,
    %c1 = arith.constant 1 : index
    %c0_14 = arith.constant 0 : index
    %31 = vector.load %arg6[%c1, %c0_14] : memref<2x256xf32, #tpu.memory_space<vmem>>, vector<1x256xf32>
    %32 = arith.addf %31, %27 : vector<1x256xf32>
    %c1_15 = arith.constant 1 : index
    %c0_16 = arith.constant 0 : index
    %33 = vector.load %arg6[%c1_15, %c0_16] : memref<2x256xf32, #tpu.memory_space<vmem>>, vector<1x256xf32>
    tpu.vector_store %arg6[%c1_15, %c0_16], %32 {strides = array<i32>} : memref<2x256xf32, #tpu.memory_space<vmem>>, vector<1x256xf32>,
    %c0_i32_17 = arith.constant 0 : i32
    %34 = arith.cmpi eq, %arg2, %c0_i32_17 : i32
    %35 = arith.extui %34 : i1 to i32
    %c0_i32_18 = arith.constant 0 : i32
    %36 = arith.cmpi ne, %35, %c0_i32_18 : i32
    scf.if %36 {
      %c0_19 = arith.constant 0 : index
      %c0_20 = arith.constant 0 : index
      %37 = vector.load %arg6[%c0_19, %c0_20] : memref<2x256xf32, #tpu.memory_space<vmem>>, vector<1x256xf32>
      %38 = vector.shape_cast %37 : vector<1x256xf32> to vector<1x1x256xf32>
      %cst_21 = arith.constant dense<0.000000e+00> : vector<1xf32>
      %39 = vector.multi_reduction <add>, %38, %cst_21 [1, 2] : vector<1x1x256xf32> to vector<1xf32>
      %40 = vector.shape_cast %39 : vector<1xf32> to vector<1x1x1xf32>
      %41 = vector.extract %40[0, 0, 0] : f32 from vector<1x1x1xf32>
      %c1_22 = arith.constant 1 : index
      %c0_23 = arith.constant 0 : index
      %42 = vector.load %arg6[%c1_22, %c0_23] : memref<2x256xf32, #tpu.memory_space<vmem>>, vector<1x256xf32>
      %43 = vector.shape_cast %42 : vector<1x256xf32> to vector<1x1x256xf32>
      %cst_24 = arith.constant dense<0.000000e+00> : vector<1xf32>
      %44 = vector.multi_reduction <add>, %43, %cst_24 [1, 2] : vector<1x1x256xf32> to vector<1xf32>
      %45 = vector.shape_cast %44 : vector<1xf32> to vector<1x1x1xf32>
      %46 = vector.extract %45[0, 0, 0] : f32 from vector<1x1x1xf32>
      %47 = tpu.iota {dimensions = array<i32: 1>} : vector<1x128xi32>
      %c0_i32_25 = arith.constant 0 : i32
      %48 = vector.broadcast %c0_i32_25 : i32 to vector<1x128xi32>
      %49 = arith.cmpi eq, %47, %48 : vector<1x128xi32>
      %c1_i32 = arith.constant 1 : i32
      %50 = vector.broadcast %c1_i32 : i32 to vector<1x128xi32>
      %51 = arith.cmpi eq, %47, %50 : vector<1x128xi32>
      %cst_26 = arith.constant 0.000000e+00 : f32
      %52 = vector.broadcast %46 : f32 to vector<1x128xf32>
      %53 = vector.broadcast %cst_26 : f32 to vector<1x128xf32>
      %54 = arith.select %51, %52, %53 : vector<1x128xi1>, vector<1x128xf32>
      %55 = vector.broadcast %41 : f32 to vector<1x128xf32>
      %56 = arith.select %49, %55, %54 : vector<1x128xi1>, vector<1x128xf32>
      %c0_27 = arith.constant 0 : index
      %c0_28 = arith.constant 0 : index
      %c0_29 = arith.constant 0 : index
      %c0_30 = arith.constant 0 : index
      %57 = vector.load %arg5[%c0_27, %c0_28, %c0_29, %c0_30] : memref<1x1x1x128xf32, #tpu.memory_space<vmem>>, vector<1x1x1x128xf32>
      %58 = vector.shape_cast %57 : vector<1x1x1x128xf32> to vector<1x128xf32>
      %59 = vector.shape_cast %56 : vector<1x128xf32> to vector<1x1x1x128xf32>
      tpu.vector_store %arg5[%c0_27, %c0_28, %c0_29, %c0_30], %59 {strides = array<i32>} : memref<1x1x1x128xf32, #tpu.memory_space<vmem>>, vector<1x1x1x128xf32>,
    } else {
    }
    return
  }
  func.func @transform_0(%arg0: i32, %arg1: i32, %arg2: i32) -> (i32, i32, i32) {
    %c1_i32 = arith.constant 1 : i32
    %0 = arith.muli %arg1, %c1_i32 : i32
    %1 = arith.addi %0, %arg2 : i32
    %c0_i32 = arith.constant 0 : i32
    %2 = arith.minsi %1, %c0_i32 : i32
    %c0_i32_0 = arith.constant 0 : i32
    %c0_i32_1 = arith.constant 0 : i32
    return %arg0, %c0_i32_0, %2 : i32, i32, i32
  }
  func.func @transform_1(%arg0: i32, %arg1: i32, %arg2: i32) -> (i32, i32, i32) {
    %c1_i32 = arith.constant 1 : i32
    %0 = arith.muli %arg1, %c1_i32 : i32
    %1 = arith.addi %0, %arg2 : i32
    %c0_i32 = arith.constant 0 : i32
    %2 = arith.minsi %1, %c0_i32 : i32
    %c0_i32_0 = arith.constant 0 : i32
    %c0_i32_1 = arith.constant 0 : i32
    return %arg0, %c0_i32_0, %2 : i32, i32, i32
  }
  func.func @transform_2(%arg0: i32, %arg1: i32, %arg2: i32) -> (i32, i32, i32, i32) {
    %c0_i32 = arith.constant 0 : i32
    %c0_i32_0 = arith.constant 0 : i32
    %c0_i32_1 = arith.constant 0 : i32
    return %arg0, %arg1, %c0_i32, %c0_i32_0 : i32, i32, i32, i32
  }
}

</mosaic_0001>

<bundles_post_ra>
// kernel: tpu_custom_call.1
= control target key start
LH: loop header
LB: loop body
LE: loop exit
PB: predicated region body
PF: predicated region fallthrough
CT: control target
= control target key end

     0   :  { %7 = vsyncpa [#allocation4], 0  ;;  %s1008_s0 = inlined_call_operand.hbm [shape: f32[2,4,256], index: 0, kind: input, shape index: {}]   ;;  %s1009_s1 = inlined_call_operand.hbm [shape: s32[2,1,256], index: 1, kind: input, shape index: {}]   ;;  %s1010_s2 = inlined_call_operand.hbm [shape: f32[2,1,1,128], index: 2, kind: output, shape index: {}]  }
   0x1   :  { %9 = vsyncpa [#allocation4 + $0x1], 0 }
   0x2   :  { %10 = vsyncpa [#allocation7], 0 }
   0x3   :  { %12 = vsyncpa [#allocation7 + $0x1], 0 }
   0x4   :  { %13 = vsyncpa [#allocation5], 0 }
   0x5   :  { %15 = vsyncpa [#allocation5 + $0x1], 0  ;;  %s840_s9 = smov 0   ;;  %s842_s10 = smov 0  }
   0x6   :  { %s844_s11 = smov 0   ;;  %s846_s12 = smov 0  }
   0x7   :  { %s848_s13 = smov 0   ;;  %s850_s14 = smov 0  }
   0x8 LB: > { %s583_s15 = sadd.s32 4294967295, %s822_s14   ;;  %s584_s16 = sadd.s32 4294967294, %s822_s14   ;;  %s822_s14 = sphi %s850_s14, %s21_s14   ;;  %s818_s13 = sphi %s848_s13, %s1022_s13   ;;  %s814_s12 = sphi %s846_s12, %s1021_s12   ;;  %s810_s11 = sphi %s844_s11, %s1020_s11   ;;  %s806_s10 = sphi %s842_s10, %s1019_s10   ;;  %s802_s9 = sphi %s840_s9, %s1018_s9  }
   0x9   : > { %s40_s17 = sadd.s32 1, %s818_s13  ;;  %s55_s18 = sadd.s32 1, %s810_s11 }
   0xa   : > { %p42_p0 = scmp.ge.s32.totalorder %s40_s17, 2  ;;  %p62_p1 = scmp.ne.s32.totalorder %s810_s11, %s806_s10 }
   0xb   : > { %p63_p2 = scmp.eq.s32.totalorder %s822_s14, 0  ;;  %p68_p3 = scmp.ne.s32.totalorder %s806_s10, %s802_s9 }
   0xc   : > { %s1024_s17 = smov (%p42_p0, %s40_s17), 0  ;;  %p69_p5 = scmp.eq.s32.totalorder %s583_s15, 0 }
   0xd   : > { %p881_p4 = por %p63_p2, %p62_p1  ;;  %s50_s20 = ssub.s32 %s818_s13, %s1024_s17 }
   0xe   : > { %p128_p6 = scmp.eq.s32.totalorder %s583_s15, 1  ;;  %p53_p7 = scmp.eq.s32.totalorder %s50_s20, 0 }
   0xf   : > { %p887_p8 = por %p69_p5, %p68_p3  ;;  %p134_p10 = scmp.eq.s32.totalorder %s584_s16, 1 }
  0x10   : > { %p891_p9 = por %p128_p6, %p62_p1  ;;  %p586_p12 = scmp.ge.s32.totalorder %s822_s14, 2 }
  0x11   : > { %s896_s23 = scalar_select %p53_p7, %s810_s11, %s55_s18  }
  0x12   : > { %p898_p11 = por %p134_p10, %p68_p3  ;;  %p619_p13 = scmp.lt.s32.totalorder %s822_s14, 2 }
  0x13   : > { %s154_s25 = sand.u32 1, %s810_s11   ;;  %s597_s27 = sshll.u32 %s818_s13, 3 }
  0x14   : > { %s587_s26 = sshll.u32 %s154_s25, 3  ;;  %s168_s30 = scalar_lea.hbm %s1008_s0, %s597_s27 }
  0x15   : > { %s158_s3 = scalar_lea.vmem [#allocation3], %s587_s26  ;;  %s170_s5 = sshll.u32 %s168_s30, 4  ;;  %s171_s5 = int_to_ptr.hbm [resolvable:$true] %s170_s5 }
  0x16   : > { %s172_s4 = sshll.u32 %s158_s3, 4  ;;  %p911_p0 = pnand %p619_p13, %p881_p4  ;;  %s173_s4 = int_to_ptr.vmem [resolvable:$true] %s172_s4 }
  0x17   : > { %p592_p1 = scmp.ge.s32.totalorder %s822_s14, 1  ;;  %p201_p2 = scmp.lt.s32.totalorder %s822_s14, 3 }
  0x18   : > { %s155_s7 = scalar_lea.sflag [#allocation4], %s154_s25  ;;  %s590_s8 = sshll.u32 %s154_s25, 1 }
  0x19   : > { %611 = dma.hbm_to_vmem [thread:$0]  (!%p911_p0), %s171_s5, 128, %s173_s4, %s155_s7  }
  0x1a   : > { %p202_p3 = pnand %p592_p1, %p201_p2  ;;  %s591_s15 = sshll.u32 %s818_s13, 1 }
  0x1b   : > { %s192_s20 = scalar_lea.hbm %s1009_s1, %s591_s15  ;;  %s183_s26 = scalar_lea.vmem [#allocation6], %s590_s8 }
  0x1c   : > { %s196_s19 = sshll.u32 %s183_s26, 4  ;;  %s194_s27 = sshll.u32 %s192_s20, 4  ;;  %s197_s19 = int_to_ptr.vmem [resolvable:$true] %s196_s19  ;;  %s195_s27 = int_to_ptr.hbm [resolvable:$true] %s194_s27 }
  0x1d   : > { %s180_s28 = scalar_lea.sflag [#allocation7], %s154_s25  ;;  %205 = sbr.rel (%p202_p3) target bundleno = 326 (0x146), region = 28 }
  0x1e   : > { %614 = dma.hbm_to_vmem [thread:$0]  (!%p911_p0), %s195_s27, 32, %s197_s19, %s180_s28  }
  0x1f   : > { %s926_s29 = sand.u32 (!%p202_p3), 1, %s806_s10  }
  0x20   : > { %s593_s30 = sshll.u32 (!%p202_p3), %s926_s29, 3  ;;  %s208_s3 = scalar_lea.sflag (!%p202_p3), [#allocation4], %s926_s29 }
  0x21   : > { %s211_s4 = scalar_lea.vmem (!%p202_p3), [#allocation3], %s593_s30 }
  0x22   : > { %789 = dma.done.wait (%p887_p8), %s208_s3, 128  }
  0x23   : > { %791 = vsyncadd (%p887_p8), %s208_s3, 4294967168  ;;  %s594_s25 = sshll.u32 %s926_s29, 1  ;;  %s218_s5 = scalar_lea.sflag [#allocation7], %s926_s29 }
  0x24   : > { %s936_s6 = scalar_lea.vmem [#allocation6], %s594_s25 }
  0x25   : > { %793 = dma.done.wait (%p887_p8), %s218_s5, 32  }
  0x26   : > { %795 = vsyncadd (%p887_p8), %s218_s5, 4294967264  ;;  %v824_v0 = vmov 0.0   ;;  %v260_v1 = vld [vmem:[%s211_s4] sm:$0xff]  ;;  %vm267_vm0 = vcmask 1043456   ;;  %v339_v23 = vlaneseq  ;;  %v338_v24 = vld [vmem:[%s936_s6] sm:$0x3]  ;;  %s473_s8 = scalar_lea.hbm %s1010_s2, %s814_s12 }
  0x27   : > { %259 = vst [vmem:[#allocation2] sm:$0xf] %v824_v0  ;;  %v341_v32 = vperm.slane %v338_v24, 0  ;;  %v342_v33 = vperm.slane %v338_v24, 1  ;;  %vm397_vm11 = vcmask 1040384   ;;  %s246_s15 = scalar_lea.vmem [#allocation8], %s926_s29 }
  0x28   : > { %262 = vst [vmem:[#allocation1] ss:$2 sm:$0xff] %v260_v1  ;;  %v340_v29 = vshrl.u32 %v339_v23, 7  ;;  %vm403_vm12 = vcmp.lt.s32.totalorder %v339_v23, 256  ;;  %s475_s16 = sshll.u32 %s246_s15, 4  ;;  %s477_s20 = sshll.u32 %s473_s8, 4  ;;  %s476_s16 = int_to_ptr.vmem [resolvable:$true] %s475_s16  ;;  %s478_s20 = int_to_ptr.hbm [resolvable:$true] %s477_s20 }
  0x29   : > { %s464_s19 = scalar_lea.sflag [#allocation5], %s926_s29  ;;  %s750_s27 = sshra.s32 %s478_s20, 4  ;;  %s751_s27 = int_to_ptr.hbm [resolvable:$true] %s750_s27 }
  0x2a   : > { %vm343_vm1 = vcmp.eq.s32.totalorder %v340_v29, %v341_v32  ;;  %vm344_vm2 = vcmp.eq.s32.totalorder %v340_v29, %v342_v33  ;;  %s752_s28 = scalar_lea.hbm %s751_s27, 1  ;;  %s756_s3 = scalar_lea.hbm %s1010_s2, 2 }
  0x2b   : > { %p753_p4 = scmp.ne.s32.totalorder %s751_s27, %s752_s28  ;;  %p757_p7 = scmp.lt.s32.totalorder %s751_s27, %s1010_s2 }
  0x2c   : > { %p758_p8 = scmp.lt.s32.totalorder %s756_s3, %s752_s28 }
  0x2d   : > { %p754_p5 = pnand %p753_p4, %p891_p9 }
  0x2e   : > { %p759_p10 = por %p758_p8, %p757_p7 }
  0x2f   : > { %v263_v2 = vld.sshfl [vmem:[#allocation1] sm:$0xff pattern:$0x75316420]  ;;  %v264_v3 = vld.sshfl [vmem:[#allocation1 + $0x8] sm:$0xff pattern:$0x75316420]  ;;  %p755_p6 = pneg %p754_p5 }
  0x30   : > { %v268_v4 = vsel %vm267_vm0, %v263_v2, -inf  ;;  %v275_v5 = vsel %vm267_vm0, %v264_v3, -inf }
  0x31   : > { %v269_v6 = vrot.slane %v268_v4, 4  ;;  %v276_v7 = vrot.slane %v275_v5, 4  ;;  %p760_p13 = pnand %p759_p10, %p755_p6 }
  0x33   : > { %v270_v8 = vmax.f32 %v268_v4, %v269_v6  ;;  %v277_v9 = vmax.f32 %v275_v5, %v276_v7 }
  0x35   : > { %v271_v10 = vrot.slane %v270_v8, 2  ;;  %v278_v11 = vrot.slane %v277_v9, 2 }
  0x37   : > { %v272_v12 = vmax.f32 %v270_v8, %v271_v10  ;;  %v279_v13 = vmax.f32 %v277_v9, %v278_v11 }
  0x39   : > { %v273_v14 = vrot.slane %v272_v12, 1  ;;  %v280_v15 = vrot.slane %v279_v13, 1 }
  0x3b   : > { %v274_v16 = vmax.f32 %v272_v12, %v273_v14  ;;  %v281_v17 = vmax.f32 %v279_v13, %v280_v15 }
  0x3d   : > { %v284_v18 = vrot.slane %v281_v17, 4 }
  0x3f   : > { %v285_v19 = vsel %vm267_vm0, %v274_v16, %v284_v18 }
  0x40   : > { %v287_v20 = vsub.f32 %v260_v1, %v285_v19 }
  0x42   : > { %v288_v21 = vmul.f32 1.442695, %v287_v20 }
  0x44   : > { %670 = vpow2.f32 %v288_v21 }
  0x4a   : > { %v671_v22 = vpop.eup %670 }
  0x4b   : > { %291 = vst [vmem:[#allocation1] ss:$2 sm:$0xff] %v671_v22  ;;  %v366_v36 = vmul.f32 %v671_v22, %v671_v22 }
  0x52   : > { %v292_v25 = vld.sshfl [vmem:[#allocation1] sm:$0xff pattern:$0x75316420]  ;;  %v293_v26 = vld.sshfl [vmem:[#allocation1 + $0x8] sm:$0xff pattern:$0x75316420] }
  0x53   : > { %v296_v27 = vsel %vm267_vm0, %v292_v25, 0.0  ;;  %v303_v28 = vsel %vm267_vm0, %v293_v26, 0.0  ;;  %345 = vst [vmem:[#allocation1] ss:$2 sm:$0xff] %v671_v22 }
  0x54   : > { %v297_v30 = vrot.slane %v296_v27, 4  ;;  %v304_v31 = vrot.slane %v303_v28, 4 }
  0x56   : > { %v298_v34 = vadd.f32 %v297_v30, %v296_v27  ;;  %v305_v35 = vadd.f32 %v304_v31, %v303_v28 }
  0x58   : > { %v299_v37 = vrot.slane %v298_v34, 2  ;;  %v306_v38 = vrot.slane %v305_v35, 2 }
  0x5a   : > { %v300_v39 = vadd.f32 %v299_v37, %v298_v34  ;;  %v307_v40 = vadd.f32 %v306_v38, %v305_v35  ;;  %v346_v41 = vld.sshfl [vmem:[#allocation1] sm:$0xff pattern:$0x75316420]  ;;  %v347_v42 = vld.sshfl [vmem:[#allocation1 + $0x8] sm:$0xff pattern:$0x75316420] }
  0x5b   : > { %v350_v43 = vsel %vm343_vm1, %v346_v41, 0.0  ;;  %v351_v44 = vsel %vm344_vm2, %v347_v42, 0.0  ;;  %368 = vst [vmem:[#allocation1] ss:$2 sm:$0xff] %v366_v36 }
  0x5c   : > { %v301_v45 = vrot.slane %v300_v39, 1  ;;  %v308_v46 = vrot.slane %v307_v40, 1  ;;  %v352_v47 = vsel %vm267_vm0, %v350_v43, 0.0  ;;  %v359_v48 = vsel %vm267_vm0, %v351_v44, 0.0 }
  0x5d   : > { %v353_v49 = vrot.slane %v352_v47, 4  ;;  %v360_v50 = vrot.slane %v359_v48, 4  ;;  %v393_v43 = vld [vmem:[#allocation2] ss:$2 sm:$0x3] }
  0x5e   : > { %v302_v51 = vadd.f32 %v301_v45, %v300_v39  ;;  %v309_v52 = vadd.f32 %v308_v46, %v307_v40  ;;  %v407_v46 = vld [vmem:[#allocation2 + $0x1] ss:$2 sm:$0x3] }
  0x5f   : > { %v354_v53 = vadd.f32 %v353_v49, %v352_v47  ;;  %v361_v54 = vadd.f32 %v360_v50, %v359_v48 }
  0x60   : > { %672 = vrcp.f32 %v302_v51  ;;  %vm315_vm3 = vweird.f32 %v302_v51  ;;  %v319_v4 = vand.u32 2147483647, %v302_v51  ;;  %v321_v5 = vand.u32 2147483648, %v302_v51 }
  0x61   : > { %674 = vrcp.f32 %v309_v52  ;;  %v355_v55 = vrot.slane %v354_v53, 2  ;;  %v362_v56 = vrot.slane %v361_v54, 2  ;;  %vm329_vm4 = vweird.f32 %v309_v52 }
  0x62   : > { %v369_v57 = vld.sshfl [vmem:[#allocation1] sm:$0xff pattern:$0x75316420]  ;;  %v370_v58 = vld.sshfl [vmem:[#allocation1 + $0x8] sm:$0xff pattern:$0x75316420] }
  0x63   : > { %v373_v59 = vsel %vm267_vm0, %v369_v57, 0.0  ;;  %v380_v61 = vsel %vm267_vm0, %v370_v58, 0.0  ;;  %v356_v63 = vadd.f32 %v355_v55, %v354_v53  ;;  %v363_v0 = vadd.f32 %v362_v56, %v361_v54 }
  0x64   : > { %v374_v60 = vrot.slane %v373_v59, 4  ;;  %v381_v1 = vrot.slane %v380_v61, 4  ;;  %v333_v8 = vand.u32 2147483647, %v309_v52  ;;  %v335_v9 = vand.u32 2147483648, %v309_v52 }
  0x65   : > { %v357_v14 = vrot.slane %v356_v63, 1  ;;  %v364_v15 = vrot.slane %v363_v0, 1  ;;  %vm320_vm8 = vcmp.eq.f32.partialorder %v319_v4, 8.507059e+37  ;;  %v322_v20 = vor.u32 1.1754944e-38, %v321_v5 }
  0x66   : > { %v673_v62 = vpop.eup %672  ;;  %v375_v6 = vadd.f32 %v374_v60, %v373_v59  ;;  %v382_v12 = vadd.f32 %v381_v1, %v380_v61  ;;  %v336_v24 = vor.u32 1.1754944e-38, %v335_v9  ;;  %vm334_vm10 = vcmp.eq.f32.partialorder %v333_v8, 8.507059e+37 }
  0x67   : > { %v675_v2 = vpop.eup %674  ;;  %v311_v3 = vmul.f32 %v673_v62, %v302_v51  ;;  %vm316_vm5 = vweird.f32 %v673_v62  ;;  %v358_v28 = vadd.f32 %v357_v14, %v356_v63  ;;  %v365_v29 = vadd.f32 %v364_v15, %v363_v0 }
  0x68   : > { %v325_v7 = vmul.f32 %v675_v2, %v309_v52  ;;  %v376_v11 = vrot.slane %v375_v6, 2  ;;  %vm330_vm6 = vweird.f32 %v675_v2  ;;  %v383_v18 = vrot.slane %v382_v12, 2  ;;  %vm954_vm7 = vmor %vm315_vm3, %vm316_vm5 }
  0x69   : > { %v312_v10 = vsub.f32 1.0, %v311_v3  ;;  %vm331_vm9 = vmor %vm329_vm4, %vm330_vm6 }
  0x6a   : > { %v326_v13 = vsub.f32 1.0, %v325_v7  ;;  %v377_v17 = vadd.f32 %v376_v11, %v375_v6  ;;  %v384_v26 = vadd.f32 %v383_v18, %v382_v12 }
  0x6b   : > { %v313_v16 = vmul.f32 %v673_v62, %v312_v10 }
  0x6c   : > { %v327_v21 = vmul.f32 %v675_v2, %v326_v13  ;;  %v378_v25 = vrot.slane %v377_v17, 1  ;;  %v385_v31 = vrot.slane %v384_v26, 1  ;;  %v455_v13 = vand.u32 127, %v339_v23 }
  0x6d   : > { %v314_v22 = vadd.f32 %v673_v62, %v313_v16 }
  0x6e   : > { %v328_v27 = vadd.f32 %v675_v2, %v327_v21  ;;  %v379_v34 = vadd.f32 %v378_v25, %v377_v17  ;;  %v386_v36 = vadd.f32 %v385_v31, %v384_v26  ;;  %vm457_vm13 = vcmp.eq.s32.totalorder %v455_v13, 1 }
  0x6f   : > { %v318_v30 = vsel %vm954_vm7, %v673_v62, %v314_v22  ;;  %vm456_vm14 = vcmp.eq.s32.totalorder %v455_v13, 0 }
  0x70   : > { %v323_v32 = vsel %vm320_vm8, %v322_v20, %v318_v30  ;;  %v332_v33 = vsel %vm331_vm9, %v675_v2, %v328_v27 }
  0x71   : > { %v337_v35 = vsel %vm334_vm10, %v336_v24, %v332_v33  ;;  %v389_v37 = vmul.f32 %v323_v32, %v323_v32  ;;  %v387_v38 = vmul.f32 %v358_v28, %v323_v32 }
  0x72   : > { %v388_v39 = vmul.f32 %v365_v29, %v337_v35  ;;  %v390_v40 = vmul.f32 %v337_v35, %v337_v35 }
  0x73   : > { %v391_v41 = vmul.f32 %v389_v37, %v379_v34 }
  0x74   : > { %v392_v42 = vmul.f32 %v390_v40, %v386_v36  ;;  %v396_v44 = vrot.slane %v388_v39, 7 }
  0x76   : > { %v398_v45 = vsel %vm397_vm11, %v387_v38, %v396_v44  ;;  %v410_v47 = vrot.slane %v392_v42, 7 }
  0x77   : > { %v400_v48 = vadd.f32 %v398_v45, %v393_v43 }
  0x78   : > { %v411_v49 = vsel %vm397_vm11, %v391_v41, %v410_v47 }
  0x79   : > { %405 = vst.msk [vmem:[#allocation2] ss:$2 sm:$0x3] %vm403_vm12, %v400_v48  ;;  %v413_v50 = vadd.f32 %v411_v49, %v407_v46 }
  0x7b   : > { %414 = vst.msk [vmem:[#allocation2 + $0x1] ss:$2 sm:$0x3] %vm403_vm12, %v413_v50 }
  0x80   : > { %v418_v51 = vld [vmem:[#allocation2] ss:$2 sm:$0x3] }
  0x81   : > { %v420_v52 = vperm.slane %v418_v51, 0  ;;  %v421_v53 = vperm.slane %v418_v51, 1 }
  0x82   : > { %v436_v54 = vld [vmem:[#allocation2 + $0x1] ss:$2 sm:$0x3] }
  0x83   : > { %v424_v55 = vsel %vm397_vm11, %v420_v52, 0.0  ;;  %v425_v56 = vsel %vm397_vm11, %v421_v53, 0.0  ;;  %v438_v57 = vperm.slane %v436_v54, 0  ;;  %v439_v58 = vperm.slane %v436_v54, 1 }
  0x84   : > { %v426_v59 = vadd.f32 %v425_v56, %v424_v55 }
  0x85   : > { %v442_v60 = vsel %vm397_vm11, %v438_v57, 0.0  ;;  %v443_v61 = vsel %vm397_vm11, %v439_v58, 0.0 }
  0x86   : > { %427 = vadd.xlane.f32.xlu0 %v426_v59  ;;  %v444_v62 = vadd.f32 %v443_v61, %v442_v60 }
  0x8e   : > { %445 = vadd.xlane.f32.xlu0 %v444_v62 }
  0xf9   : > { %v428_v63 = vpop.xlane.xlu0 %427 }
  0xfa   : > { %v429_v0 = vrot.slane %v428_v63, 4 }
  0xfc   : > { %v430_v1 = vadd.f32 %v429_v0, %v428_v63 }
  0xfe   : > { %v431_v2 = vrot.slane %v430_v1, 2 }
 0x100   : > { %v432_v3 = vadd.f32 %v431_v2, %v430_v1 }
 0x101   : > { %v446_v4 = vpop.xlane.xlu0 %445 }
 0x102   : > { %v447_v5 = vrot.slane %v446_v4, 4  ;;  %v433_v6 = vrot.slane %v432_v3, 1 }
 0x104   : > { %v448_v7 = vadd.f32 %v447_v5, %v446_v4  ;;  %v434_v8 = vadd.f32 %v433_v6, %v432_v3 }
 0x106   : > { %v449_v9 = vrot.slane %v448_v7, 2  ;;  %598 = vpush %v434_v8 }
 0x108   : > { %v450_v10 = vadd.f32 %v449_v9, %v448_v7 }
 0x10a   : > { %v451_v11 = vrot.slane %v450_v10, 1 }
 0x10c   : > { %v452_v12 = vadd.f32 %v451_v11, %v450_v10 }
 0x10e   : > { %600 = vpush %v452_v12 }
 0x137   : > { %s599_s18 = spop %598 }
 0x138   : > { %v460_v15 = vstv %s599_s18 }
 0x13f   : > { %s601_s26 = spop %600 }
 0x140   : > { %v458_v14 = vstv %s601_s26 }
 0x141   : > { %v459_v16 = vsel %vm457_vm13, %v458_v14, 0.0 }
 0x142   : > { %v461_v17 = vsel %vm456_vm14, %v460_v15, %v459_v16 }
 0x143   : > { %462 = vst [vmem:[%s246_s15] sm:$0x1] %v461_v17 }
 0x144   : > { %763 = shalt.err (!%p760_p13)
}
 0x145   : > { %606 = dma.vmem_to_hbm [thread:$0]  (%p891_p9), %s476_s16, 16, %s478_s20, %s464_s19  }
 0x146 PF: > { %s489_s29 = sand.u32 1, %s802_s9   ;;  %p616_p0 = pnand %p586_p12, %p898_p11 }
 0x147   : > { %s490_s5 = scalar_lea.sflag [#allocation5], %s489_s29 }
 0x148   : > { %p617_p1 = pneg %p616_p0 }
 0x14a   : > { %797 = dma.done.wait (%p617_p1), %s490_s5, 16  }
 0x14b   : > { %799 = vsyncadd (%p617_p1), %s490_s5, 4294967280  ;;  %s21_s14 = sadd.s32 1, %s822_s14   ;;  %s1018_s9 = smov %s806_s10 }
 0x14c   : > { %p18_p2 = scmp.ge.s32.totalorder %s21_s14, 4   ;;  %s1019_s10 = smov %s810_s11 }
 0x14d   : > { %s1020_s11 = smov %s896_s23  ;;  %s1021_s12 = smov %s818_s13 }
 0x14e   : > { %s1022_s13 = smov %s1024_s17  ;;  %20 = sbr.rel (!%p18_p2) target bundleno = 8 (0x8), region = 95 }
 0x153   :  { %495 = vsyncpa [#allocation4], 1 }
 0x154   :  { %497 = vsyncpa [#allocation4 + $0x1], 1 }
 0x155   :  { %498 = vsyncpa [#allocation7], 1 }
 0x156   :  { %500 = vsyncpa [#allocation7 + $0x1], 1 }
 0x157   :  { %501 = vsyncpa [#allocation5], 1 }
 0x158   :  { %503 = vsyncpa [#allocation5 + $0x1], 1 }

</bundles_post_ra>
